<compile_context>
chip_gen: v7x
topology: tpu7x:2x2x1
jax: 0.10.0
libtpu: 0.0.40
codegen_flags: <defaults>
</compile_context>

<pallas_src>
import jax
import jax.numpy as jnp
from jax import lax
from jax.experimental import pallas as pl
from jax.experimental.pallas import tpu as pltpu

_LANES = 128
_SUBLANES = 8
_MAX_TILE_ROWS = 2048            # rows (of 128 px each) per spatial tile, cap
_VMEM_BUDGET = 14 * 1024 * 1024  # blocks (double-buffered) + temp allowance


def _cdiv(a, b):
    return -(-a // b)


def _granule_for(dtype):
    """Minimum row-tile granularity so a non-full block satisfies TPU packing."""
    isz = jnp.dtype(dtype).itemsize
    if isz >= 4:
        return 8
    if isz == 2:
        return 16
    return 32


def _make_kernel(has_mask, ragged, tile_rows, valid_rows, tiles_per_part,
                 num_row_blocks):
    """Kernel specialized on mask presence and ragged-tail handling."""

    def kernel(*refs):
        if has_mask:
            t_ref, r_ref, m_ref, sum_ref, cnt_ref = refs
        else:
            t_ref, r_ref, sum_ref, cnt_ref = refs

        t = pl.program_id(2)  # spatial tile within the partition (innermost)

        @pl.when(t == 0)
        def _():
            sum_ref[...] = jnp.zeros_like(sum_ref)
            cnt_ref[...] = jnp.zeros_like(cnt_ref)

        tv = t_ref[...].astype(jnp.float32)          # (1, C, TR, 128)
        rv = r_ref[...].astype(jnp.float32)          # (1, C, TR, 128)

        # Channel reductions over leading dims -> elementwise vreg adds of
        # (TR, 128) planes (pure VPU, no XLU).
        diff = jnp.sum(jnp.abs(tv - rv), axis=(0, 1))        # (TR, 128)
        sum_r = jnp.sum(rv, axis=(0, 1))                     # (TR, 128)
        sum_t = jnp.sum(tv, axis=(0, 1))                     # (TR, 128)
        keep = jnp.logical_and(sum_r > 0.0, sum_t > 0.0)

        if has_mask:
            mv = m_ref[...][0].astype(jnp.float32)           # (TR, 128)
            # PyTorch: (valid * mask).byte() keeps nonzero after truncation
            # toward zero.  (Documented divergence: mask values >= 256 wrap to
            # 0 in torch .byte(); they stay nonzero here.)
            keep = jnp.logical_and(keep, mv.astype(jnp.int32) != 0)

        def accumulate(keep_rows, guard_garbage):
            keep_f = keep_rows.astype(jnp.float32)
            if guard_garbage:
                # Tail tile may contain stale VMEM rows (possibly NaN/Inf):
                # use a select so 0 * NaN can never poison the sum.
                contrib = jnp.where(keep_rows, diff, 0.0)
            else:
                contrib = diff * keep_f                      # folded select
            # Fold (TR, 128) into one vreg-shaped (8, 128) partial with
            # elementwise VPU adds (layout-preserving reshape); the single
            # cross-lane reduce happens once, in the JAX wrapper.
            part_sum = jnp.sum(contrib.reshape(-1, _SUBLANES, _LANES), axis=0)
            part_cnt = jnp.sum(keep_f.reshape(-1, _SUBLANES, _LANES), axis=0)
            sum_ref[...] += part_sum[None, None]
            cnt_ref[...] += part_cnt[None, None]

        if ragged:
            p = pl.program_id(1)
            rb = p * tiles_per_part + t                      # global row block
            is_tail = rb == (num_row_blocks - 1)

            @pl.when(is_tail)
            def _():
                row_ids = rb * tile_rows + lax.broadcasted_iota(
                    jnp.int32, keep.shape, 0)
                accumulate(jnp.logical_and(keep, row_ids < valid_rows), True)

            @pl.when(jnp.logical_not(is_tail))
            def _():
                accumulate(keep, False)
        else:
            accumulate(keep, False)

    return kernel


def photometric_loss(target, recon, mask=None, *, max_rows_per_tile=None):
    """Pallas implementation of PhotometricLoss.forward(target, recon, mask)."""
    assert target.ndim == 4, f"expected target dim 4, got {target.ndim}"
    assert recon.ndim == 4, f"expected recon dim 4, got {recon.ndim}"
    assert target.shape == recon.shape, (target.shape, recon.shape)

    N, C, H, W = target.shape
    S = H * W

    has_mask = mask is not None
    if has_mask:
        # Stream the mask natively when it is a 2/4-byte type; otherwise cast.
        if jnp.dtype(mask.dtype).itemsize in (2, 4):
            m_dtype = mask.dtype
        else:
            m_dtype = jnp.float32

    granule = max(_granule_for(target.dtype), _granule_for(recon.dtype),
                  _granule_for(m_dtype) if has_mask else 8)

    # Lane-dense view: (N, C, S) -> (N, C, R, 128).  Pure metadata (free) when
    # S is a multiple of 128; otherwise zero-pad the flat pixel axis (zero
    # pixels can never be "valid", so they never contribute).
    # TODO(synk): the S % 128 != 0 pad is a full HBM copy of target/recon; a
    # zero-copy path would stream flat (1, C, TR*128) blocks and mask on the
    # flat pixel index (sublane channel reduction) — not implemented here.
    R = _cdiv(S, _LANES)
    if R < granule:
        R = granule                      # tiny images: at least one legal tile
    S_pad = R * _LANES

    def _pad_flat(x):
        if S_pad != S:
            x = jnp.pad(x, [(0, 0)] * (x.ndim - 1) + [(0, S_pad - S)])
        return x

    tgt = _pad_flat(target.reshape(N, C, S)).reshape(N, C, R, _LANES)
    rec = _pad_flat(recon.reshape(N, C, S)).reshape(N, C, R, _LANES)

    operands = [tgt, rec]
    if has_mask:
        m = mask
        if jnp.dtype(m.dtype) != jnp.dtype(m_dtype):
            m = m.astype(m_dtype)
        m = _pad_flat(m.reshape(N, S)).reshape(N, R, _LANES)
        operands.append(m)

    # ---- tile-size selection -------------------------------------------------
    t_isz = jnp.dtype(tgt.dtype).itemsize
    r_isz = jnp.dtype(rec.dtype).itemsize
    m_isz = jnp.dtype(operands[2].dtype).itemsize if has_mask else 0
    stream_row_bytes = _LANES * (C * (t_isz + r_isz) + m_isz)
    temp_row_bytes = _LANES * 4 * (2 * C + 8)   # conservative f32 temporaries
    row_budget = _VMEM_BUDGET // (2 * stream_row_bytes + temp_row_bytes)

    TR = min(row_budget, _MAX_TILE_ROWS, (R // granule) * granule)
    if max_rows_per_tile is not None:
        TR = min(TR, max_rows_per_tile)
    TR = max((TR // granule) * granule, granule)

    num_rb = _cdiv(R, TR)                       # row blocks per image
    ragged = (num_rb * TR) != R
    # Partition axis: only 2-way when it splits evenly (no duplicate tiles).
    P = 2 if (num_rb >= 2 and num_rb % 2 == 0) else 1
    T = num_rb // P

    def in_map(n, p, t):
        return (n, 0, p * T + t, 0)

    def mask_map(n, p, t):
        return (n, p * T + t, 0)

    def out_map(n, p, t):
        return (n, p, 0, 0)

    in_specs = [
        pl.BlockSpec((1, C, TR, _LANES), in_map),
        pl.BlockSpec((1, C, TR, _LANES), in_map),
    ]
    if has_mask:
        in_specs.append(pl.BlockSpec((1, TR, _LANES), mask_map))

    out_specs = [
        pl.BlockSpec((1, 1, _SUBLANES, _LANES), out_map),
        pl.BlockSpec((1, 1, _SUBLANES, _LANES), out_map),
    ]
    out_shape = (
        jax.ShapeDtypeStruct((N, P, _SUBLANES, _LANES), jnp.float32),
        jax.ShapeDtypeStruct((N, P, _SUBLANES, _LANES), jnp.float32),
    )

    in_bytes = (tgt.size * t_isz + rec.size * r_isz +
                (operands[2].size * m_isz if has_mask else 0))
    out_bytes = 2 * N * P * _SUBLANES * _LANES * 4
    cost = pl.CostEstimate(flops=int(10 * N * C * S_pad),
                           transcendentals=0,
                           bytes_accessed=int(in_bytes + out_bytes))

    kernel = _make_kernel(has_mask=has_mask, ragged=ragged, tile_rows=TR,
                          valid_rows=R, tiles_per_part=T,
                          num_row_blocks=num_rb)

    sum_part, cnt_part = pl.pallas_call(
        kernel,
        out_shape=out_shape,
        grid_spec=pltpu.PrefetchScalarGridSpec(
            num_scalar_prefetch=0,
            grid=(N, P, T),
            in_specs=in_specs,
            out_specs=out_specs,
        ),
        compiler_params=pltpu.CompilerParams(
            dimension_semantics=("parallel", "parallel", "arbitrary"),
            vmem_limit_bytes=32 * 1024 * 1024,
        ),
        cost_estimate=cost,
    )(*operands)

    total = jnp.sum(sum_part)
    count = jnp.sum(cnt_part)
    # diff[valid_mask].mean() if any valid pixels else 0
    return jnp.where(count > 0, total / jnp.maximum(count, 1.0),
                     jnp.float32(0.0))


def _reference_loss(target, recon, mask=None):
    """Plain-JAX reference mirroring the PyTorch forward."""
    target = target.astype(jnp.float32)
    recon = recon.astype(jnp.float32)
    diff = jnp.sum(jnp.abs(target - recon), axis=1)
    valid = ((jnp.sum(recon, axis=1) > 0) &
             (jnp.sum(target, axis=1) > 0)).astype(jnp.float32)
    if mask is not None:
        valid = valid * jnp.squeeze(mask).astype(jnp.float32)
    keep = (valid.astype(jnp.int32) != 0).astype(jnp.float32)
    cnt = jnp.sum(keep)
    return jnp.where(cnt > 0, jnp.sum(diff * keep) / jnp.maximum(cnt, 1.0), 0.0)


if __name__ == "__main__":
    key = jax.random.PRNGKey(0)
    ks = jax.random.split(key, 12)

    # 1) small module-like shapes (tiny-image path), no mask and with f32 mask.
    N, C, H, W = 2, 4, 16, 16
    target = jax.random.uniform(ks[0], (N, C, H, W), dtype=jnp.float32)
    recon = jax.random.uniform(ks[1], (N, C, H, W), dtype=jnp.float32)
    zero_pix = jax.random.bernoulli(ks[2], p=0.3,
                                    shape=(N, 1, H, W)).astype(jnp.float32)
    recon = recon * (1.0 - zero_pix)

    out = jax.block_until_ready(photometric_loss(target, recon))
    ref = _reference_loss(target, recon)
    assert jnp.allclose(out, ref, rtol=1e-5, atol=1e-6), (out, ref)

    mask = jax.random.bernoulli(ks[3], p=0.7,
                                shape=(N, 1, H, W)).astype(jnp.float32)
    out_m = jax.block_until_ready(photometric_loss(target, recon, mask))
    ref_m = _reference_loss(target, recon, mask)
    assert jnp.allclose(out_m, ref_m, rtol=1e-5, atol=1e-6), (out_m, ref_m)

    # 2) multi-tile path: 2 partitions + ragged tail tile, native int32 mask.
    N2, C2, H2, W2 = 1, 3, 72, 1024          # S = 73728 -> R = 576 rows
    t2 = jax.random.uniform(ks[4], (N2, C2, H2, W2), dtype=jnp.float32)
    r2 = jax.random.uniform(ks[5], (N2, C2, H2, W2), dtype=jnp.float32)
    zp2 = jax.random.bernoulli(ks[6], p=0.2,
                               shape=(N2, 1, H2, W2)).astype(jnp.float32)
    r2 = r2 * (1.0 - zp2)
    m2 = jax.random.bernoulli(ks[7], p=0.6,
                              shape=(N2, 1, H2, W2)).astype(jnp.int32)

    out2 = jax.block_until_ready(
        photometric_loss(t2, r2, m2, max_rows_per_tile=152))
    ref2 = _reference_loss(t2, r2, m2)
    assert jnp.allclose(out2, ref2, rtol=1e-5, atol=1e-6), (out2, ref2)

    # 3) H*W % 128 != 0 -> minimal-pad fallback path.
    N3, C3, H3, W3 = 2, 3, 20, 100           # S = 2000, pads to 2048
    t3 = jax.random.uniform(ks[8], (N3, C3, H3, W3), dtype=jnp.float32)
    r3 = jax.random.uniform(ks[9], (N3, C3, H3, W3), dtype=jnp.float32)
    out3 = jax.block_until_ready(photometric_loss(t3, r3))
    ref3 = _reference_loss(t3, r3)
    assert jnp.allclose(out3, ref3, rtol=1e-5, atol=1e-6), (out3, ref3)

    # 4) bf16 target/recon streamed natively (kernel upcasts internally).
    N4, C4, H4, W4 = 2, 3, 32, 128
    t4 = jax.random.uniform(ks[10], (N4, C4, H4, W4)).astype(jnp.bfloat16)
    r4 = jax.random.uniform(ks[11], (N4, C4, H4, W4)).astype(jnp.bfloat16)
    out4 = jax.block_until_ready(photometric_loss(t4, r4))
    ref4 = _reference_loss(t4, r4)
    assert jnp.allclose(out4, ref4, rtol=1e-5, atol=1e-6), (out4, ref4)

    print("KERNEL_OK")
</pallas_src>

<mosaic_0001>
module attributes {stable_mosaic.version = 11 : i64} {
  func.func @kernel(%arg0: i32, %arg1: i32, %arg2: i32, %arg3: memref<1x4x8x128xf32, #tpu.memory_space<vmem>>, %arg4: memref<1x4x8x128xf32, #tpu.memory_space<vmem>>, %arg5: memref<1x1x8x128xf32, #tpu.memory_space<vmem>>, %arg6: memref<1x1x8x128xf32, #tpu.memory_space<vmem>>) attributes {dimension_semantics = [#tpu.dimension_semantics<parallel>, #tpu.dimension_semantics<parallel>, #tpu.dimension_semantics<arbitrary>], iteration_bounds = array<i64: 2, 1, 1>, scalar_prefetch = 0 : i64, scratch_operands = 0 : i64, tpu.core_type = #tpu.core_type<tc>, window_params = [{transform_indices = @transform_0, window_bounds = array<i64: 1, 4, 8, 128>}, {transform_indices = @transform_1, window_bounds = array<i64: 1, 4, 8, 128>}, {transform_indices = @transform_2, window_bounds = array<i64: 1, 1, 8, 128>}, {transform_indices = @transform_3, window_bounds = array<i64: 1, 1, 8, 128>}]} {
    %c0_i32 = arith.constant 0 : i32
    %0 = arith.cmpi eq, %arg2, %c0_i32 : i32
    %1 = arith.extui %0 : i1 to i32
    %c0_i32_0 = arith.constant 0 : i32
    %2 = arith.cmpi ne, %1, %c0_i32_0 : i32
    scf.if %2 {
      %cst_30 = arith.constant 0.000000e+00 : f32
      %30 = vector.broadcast %cst_30 : f32 to vector<1x1x8x128xf32>
      %c0_31 = arith.constant 0 : index
      %c0_32 = arith.constant 0 : index
      %c0_33 = arith.constant 0 : index
      %c0_34 = arith.constant 0 : index
      %31 = vector.load %arg5[%c0_31, %c0_32, %c0_33, %c0_34] : memref<1x1x8x128xf32, #tpu.memory_space<vmem>>, vector<1x1x8x128xf32>
      tpu.vector_store %arg5[%c0_31, %c0_32, %c0_33, %c0_34], %30 {strides = array<i32>} : memref<1x1x8x128xf32, #tpu.memory_space<vmem>>, vector<1x1x8x128xf32>,
      %cst_35 = arith.constant 0.000000e+00 : f32
      %32 = vector.broadcast %cst_35 : f32 to vector<1x1x8x128xf32>
      %c0_36 = arith.constant 0 : index
      %c0_37 = arith.constant 0 : index
      %c0_38 = arith.constant 0 : index
      %c0_39 = arith.constant 0 : index
      %33 = vector.load %arg6[%c0_36, %c0_37, %c0_38, %c0_39] : memref<1x1x8x128xf32, #tpu.memory_space<vmem>>, vector<1x1x8x128xf32>
      tpu.vector_store %arg6[%c0_36, %c0_37, %c0_38, %c0_39], %32 {strides = array<i32>} : memref<1x1x8x128xf32, #tpu.memory_space<vmem>>, vector<1x1x8x128xf32>,
    } else {
    }
    %c0 = arith.constant 0 : index
    %c0_1 = arith.constant 0 : index
    %c0_2 = arith.constant 0 : index
    %c0_3 = arith.constant 0 : index
    %3 = vector.load %arg3[%c0, %c0_1, %c0_2, %c0_3] : memref<1x4x8x128xf32, #tpu.memory_space<vmem>>, vector<1x4x8x128xf32>
    %c0_4 = arith.constant 0 : index
    %c0_5 = arith.constant 0 : index
    %c0_6 = arith.constant 0 : index
    %c0_7 = arith.constant 0 : index
    %4 = vector.load %arg4[%c0_4, %c0_5, %c0_6, %c0_7] : memref<1x4x8x128xf32, #tpu.memory_space<vmem>>, vector<1x4x8x128xf32>
    %5 = arith.subf %3, %4 : vector<1x4x8x128xf32>
    %6 = math.absf %5 : vector<1x4x8x128xf32>
    %cst = arith.constant dense<0.000000e+00> : vector<8x128xf32>
    %7 = vector.multi_reduction <add>, %6, %cst [0, 1] : vector<1x4x8x128xf32> to vector<8x128xf32>
    %cst_8 = arith.constant dense<0.000000e+00> : vector<8x128xf32>
    %8 = vector.multi_reduction <add>, %4, %cst_8 [0, 1] : vector<1x4x8x128xf32> to vector<8x128xf32>
    %cst_9 = arith.constant dense<0.000000e+00> : vector<8x128xf32>
    %9 = vector.multi_reduction <add>, %3, %cst_9 [0, 1] : vector<1x4x8x128xf32> to vector<8x128xf32>
    %cst_10 = arith.constant 0.000000e+00 : f32
    %10 = vector.broadcast %cst_10 : f32 to vector<8x128xf32>
    %11 = arith.cmpf ogt, %8, %10 : vector<8x128xf32>
    %cst_11 = arith.constant 0.000000e+00 : f32
    %12 = vector.broadcast %cst_11 : f32 to vector<8x128xf32>
    %13 = arith.cmpf ogt, %9, %12 : vector<8x128xf32>
    %14 = arith.andi %11, %13 : vector<8x128xi1>
    %15 = arith.extui %14 : vector<8x128xi1> to vector<8x128xi32>
    %16 = arith.sitofp %15 : vector<8x128xi32> to vector<8x128xf32>
    %17 = arith.mulf %7, %16 : vector<8x128xf32>
    %18 = vector.shape_cast %17 : vector<8x128xf32> to vector<1x8x128xf32>
    %cst_12 = arith.constant dense<0.000000e+00> : vector<8x128xf32>
    %19 = vector.multi_reduction <add>, %18, %cst_12 [0] : vector<1x8x128xf32> to vector<8x128xf32>
    %20 = vector.shape_cast %16 : vector<8x128xf32> to vector<1x8x128xf32>
    %cst_13 = arith.constant dense<0.000000e+00> : vector<8x128xf32>
    %21 = vector.multi_reduction <add>, %20, %cst_13 [0] : vector<1x8x128xf32> to vector<8x128xf32>
    %c0_14 = arith.constant 0 : index
    %c0_15 = arith.constant 0 : index
    %c0_16 = arith.constant 0 : index
    %c0_17 = arith.constant 0 : index
    %22 = vector.load %arg5[%c0_14, %c0_15, %c0_16, %c0_17] : memref<1x1x8x128xf32, #tpu.memory_space<vmem>>, vector<1x1x8x128xf32>
    %23 = vector.shape_cast %19 : vector<8x128xf32> to vector<1x1x8x128xf32>
    %24 = arith.addf %22, %23 : vector<1x1x8x128xf32>
    %c0_18 = arith.constant 0 : index
    %c0_19 = arith.constant 0 : index
    %c0_20 = arith.constant 0 : index
    %c0_21 = arith.constant 0 : index
    %25 = vector.load %arg5[%c0_18, %c0_19, %c0_20, %c0_21] : memref<1x1x8x128xf32, #tpu.memory_space<vmem>>, vector<1x1x8x128xf32>
    tpu.vector_store %arg5[%c0_18, %c0_19, %c0_20, %c0_21], %24 {strides = array<i32>} : memref<1x1x8x128xf32, #tpu.memory_space<vmem>>, vector<1x1x8x128xf32>,
    %c0_22 = arith.constant 0 : index
    %c0_23 = arith.constant 0 : index
    %c0_24 = arith.constant 0 : index
    %c0_25 = arith.constant 0 : index
    %26 = vector.load %arg6[%c0_22, %c0_23, %c0_24, %c0_25] : memref<1x1x8x128xf32, #tpu.memory_space<vmem>>, vector<1x1x8x128xf32>
    %27 = vector.shape_cast %21 : vector<8x128xf32> to vector<1x1x8x128xf32>
    %28 = arith.addf %26, %27 : vector<1x1x8x128xf32>
    %c0_26 = arith.constant 0 : index
    %c0_27 = arith.constant 0 : index
    %c0_28 = arith.constant 0 : index
    %c0_29 = arith.constant 0 : index
    %29 = vector.load %arg6[%c0_26, %c0_27, %c0_28, %c0_29] : memref<1x1x8x128xf32, #tpu.memory_space<vmem>>, vector<1x1x8x128xf32>
    tpu.vector_store %arg6[%c0_26, %c0_27, %c0_28, %c0_29], %28 {strides = array<i32>} : memref<1x1x8x128xf32, #tpu.memory_space<vmem>>, vector<1x1x8x128xf32>,
    return
  }
  func.func @transform_0(%arg0: i32, %arg1: i32, %arg2: i32) -> (i32, i32, i32, i32) {
    %c1_i32 = arith.constant 1 : i32
    %0 = arith.muli %arg1, %c1_i32 : i32
    %1 = arith.addi %0, %arg2 : i32
    %c0_i32 = arith.constant 0 : i32
    %c0_i32_0 = arith.constant 0 : i32
    %c0_i32_1 = arith.constant 0 : i32
    return %arg0, %c0_i32, %1, %c0_i32_0 : i32, i32, i32, i32
  }
  func.func @transform_1(%arg0: i32, %arg1: i32, %arg2: i32) -> (i32, i32, i32, i32) {
    %c1_i32 = arith.constant 1 : i32
    %0 = arith.muli %arg1, %c1_i32 : i32
    %1 = arith.addi %0, %arg2 : i32
    %c0_i32 = arith.constant 0 : i32
    %c0_i32_0 = arith.constant 0 : i32
    %c0_i32_1 = arith.constant 0 : i32
    return %arg0, %c0_i32, %1, %c0_i32_0 : i32, i32, i32, i32
  }
  func.func @transform_2(%arg0: i32, %arg1: i32, %arg2: i32) -> (i32, i32, i32, i32) {
    %c0_i32 = arith.constant 0 : i32
    %c0_i32_0 = arith.constant 0 : i32
    %c0_i32_1 = arith.constant 0 : i32
    return %arg0, %arg1, %c0_i32, %c0_i32_0 : i32, i32, i32, i32
  }
  func.func @transform_3(%arg0: i32, %arg1: i32, %arg2: i32) -> (i32, i32, i32, i32) {
    %c0_i32 = arith.constant 0 : i32
    %c0_i32_0 = arith.constant 0 : i32
    %c0_i32_1 = arith.constant 0 : i32
    return %arg0, %arg1, %c0_i32, %c0_i32_0 : i32, i32, i32, i32
  }
}

</mosaic_0001>

<bundles_post_ra>
// kernel: tpu_custom_call.1
= control target key start
LH: loop header
LB: loop body
LE: loop exit
PB: predicated region body
PF: predicated region fallthrough
CT: control target
= control target key end

     0   :  { %9 = vsyncpa [#allocation3], 0  ;;  %s1074_s0 = inlined_call_operand.hbm [shape: f32[2,4,8,128], index: 0, kind: input, shape index: {}]   ;;  %s1075_s1 = inlined_call_operand.hbm [shape: f32[2,4,8,128], index: 1, kind: input, shape index: {}]   ;;  %s1076_s2 = inlined_call_operand.hbm [shape: f32[2,1,8,128], index: 2, kind: output, shape index: {0}]   ;;  %s1077_s3 = inlined_call_operand.hbm [shape: f32[2,1,8,128], index: 3, kind: output, shape index: {1}]  }
   0x1   :  { %11 = vsyncpa [#allocation3 + $0x1], 0 }
   0x2   :  { %12 = vsyncpa [#allocation6], 0 }
   0x3   :  { %14 = vsyncpa [#allocation6 + $0x1], 0 }
   0x4   :  { %15 = vsyncpa [#allocation4], 0 }
   0x5   :  { %17 = vsyncpa [#allocation4 + $0x1], 0 }
   0x6   :  { %18 = vsyncpa [#allocation9], 0 }
   0x7   :  { %20 = vsyncpa [#allocation9 + $0x1], 0  ;;  %s806_s12 = smov 0   ;;  %s808_s13 = smov 0  }
   0x8   :  { %s810_s14 = smov 0   ;;  %s812_s15 = smov 0  }
   0x9   :  { %s814_s16 = smov 0   ;;  %s816_s17 = smov 0  }
   0xa LB: > { %s500_s18 = sadd.s32 4294967295, %s777_s17   ;;  %s501_s19 = sadd.s32 4294967294, %s777_s17   ;;  %s777_s17 = sphi %s816_s17, %s26_s17   ;;  %s773_s16 = sphi %s814_s16, %s1095_s16   ;;  %s769_s15 = sphi %s812_s15, %s1094_s15   ;;  %s765_s14 = sphi %s810_s14, %s1093_s14   ;;  %s761_s13 = sphi %s808_s13, %s1092_s13   ;;  %s757_s12 = sphi %s806_s12, %s1091_s12  }
   0xb   : > { %s45_s20 = sadd.s32 1, %s773_s16  ;;  %s56_s21 = sadd.s32 1, %s765_s14 }
   0xc   : > { %p47_p0 = scmp.ge.s32.totalorder %s45_s20, 2  ;;  %p63_p1 = scmp.ne.s32.totalorder %s765_s14, %s761_s13 }
   0xd   : > { %p64_p2 = scmp.eq.s32.totalorder %s777_s17, 0  ;;  %p69_p3 = scmp.ne.s32.totalorder %s761_s13, %s757_s12 }
   0xe   : > { %s1097_s20 = smov (%p47_p0, %s45_s20), 0  ;;  %p70_p5 = scmp.eq.s32.totalorder %s500_s18, 0 }
   0xf   : > { %p847_p4 = por %p64_p2, %p63_p1  ;;  %s51_s23 = ssub.s32 %s773_s16, %s1097_s20 }
  0x10   : > { %p125_p6 = scmp.eq.s32.totalorder %s500_s18, 1  ;;  %p54_p7 = scmp.eq.s32.totalorder %s51_s23, 0 }
  0x11   : > { %p853_p8 = por %p70_p5, %p69_p3  ;;  %p131_p10 = scmp.eq.s32.totalorder %s501_s19, 1 }
  0x12   : > { %p857_p9 = por %p125_p6, %p63_p1  ;;  %p546_p13 = scmp.lt.s32.totalorder %s777_s17, 2 }
  0x13   : > { %s1081_s24 = scalar_select %p853_p8, 1, 0 }
  0x14   : > { %s1082_s25 = scalar_select %p857_p9, 1, 0 }
  0x15   : > { %s862_s26 = scalar_select %p54_p7, %s765_s14, %s56_s21  }
  0x16   : > { %p864_p11 = por %p131_p10, %p69_p3  ;;  %s871_s28 = sand.u32 1, %s765_s14  }
  0x17   : > { %s504_s29 = sshll.u32 %s871_s28, 5  ;;  %s522_s30 = sshll.u32 %s773_s16, 9 }
  0x18   : > { %s1083_s27 = scalar_select %p864_p11, 1, 0 }
  0x19   : > { %s880_s6 = scalar_lea.hbm %s1074_s0, %s522_s30  ;;  %s183_s7 = scalar_lea.vmem [#allocation2], %s504_s29 }
  0x1a   : > { %s192_s8 = sshll.u32 %s183_s7, 4  ;;  %p888_p0 = pnand %p546_p13, %p847_p4  ;;  %s884_s8 = int_to_ptr.vmem [resolvable:$true] %s192_s8 }
  0x1b   : > { %s180_s10 = scalar_lea.sflag [#allocation3], %s871_s28  ;;  %s599_s11 = scalar_lea.hbm %s880_s6, 512 }
  0x1c   : > { %p600_p2 = scmp.ne.s32.totalorder %s880_s6, %s599_s11  ;;  %p601_p3 = pneg %p888_p0 }
  0x1d   : > { %s604_s21 = scalar_lea.hbm %s1074_s0, 1024  ;;  %p605_p4 = scmp.lt.u32.totalorder %s880_s6, %s1074_s0 }
  0x1e   : > { %p602_p5 = pnand %p601_p3, %p600_p2  ;;  %p606_p7 = scmp.lt.u32.totalorder %s604_s21, %s599_s11 }
  0x1f   : > { %p608_p13 = scmp.lt.u32.totalorder %s599_s11, %s880_s6 }
  0x20   : > { %p603_p6 = pneg %p602_p5  ;;  %p607_p10 = por %p606_p7, %p605_p4 }
  0x22   : > { %p609_p12 = por %p608_p13, %p607_p10 }
  0x24   : > { %p610_p1 = pnand %p609_p12, %p603_p6 }
  0x26   : > { %613 = shalt.err (!%p610_p1)
}
  0x27   : > { %s614_s4 = scalar_lea.vmem %s884_s8, 512  ;;  %s779_s5 = smov [#allocation2]  }
  0x28   : > { %p615_p2 = scmp.ne.s32.totalorder %s884_s8, %s614_s4  ;;  %s619_s7 = sshll.u32 %s779_s5, 4  ;;  %s620_s7 = int_to_ptr.vmem [resolvable:$false] %s619_s7 }
  0x29   : > { %s621_s18 = scalar_lea.vmem %s620_s7, 1024  ;;  %p622_p9 = scmp.lt.s32.totalorder %s884_s8, %s620_s7 }
  0x2a   : > { %p617_p5 = pnand %p615_p2, %p601_p3  ;;  %p623_p4 = scmp.lt.s32.totalorder %s621_s18, %s614_s4 }
  0x2c   : > { %p618_p11 = pneg %p617_p5  ;;  %p624_p7 = por %p623_p4, %p622_p9 }
  0x2e   : > { %p625_p10 = pnand %p624_p7, %p618_p11 }
  0x30   : > { %628 = shalt.err (!%p625_p10)
}
  0x31   : > { %s780_s11 = smov 128   ;;  %s781_s19 = smov 8  }
  0x32   : > { %535 = dma.hbm_to_vmem [thread:$0]  (!%p888_p0), %s880_s6, 512, %s884_s8, %s180_s10, %s780_s11, %s780_s11, %s781_s19  }
  0x33   : > { %p223_p9 = scmp.lt.s32.totalorder %s777_s17, 3  ;;  %s930_s23 = scalar_lea.hbm %s1075_s1, %s522_s30 }
  0x34   : > { %p1085_p11 = scmp.ge.s32.totalorder %s777_s17, 1  ;;  %s206_s5 = scalar_lea.vmem [#allocation5], %s504_s29 }
  0x35   : > { %s215_s7 = sshll.u32 %s206_s5, 4  ;;  %s203_s6 = scalar_lea.sflag [#allocation6], %s871_s28  ;;  %s940_s7 = int_to_ptr.vmem [resolvable:$true] %s215_s7 }
  0x36   : > { %p934_p12 = pnand %p1085_p11, %p223_p9  ;;  %s629_s8 = scalar_lea.hbm %s930_s23, 512 }
  0x37   : > { %p630_p1 = scmp.ne.s32.totalorder %s930_s23, %s629_s8  ;;  %s634_s18 = scalar_lea.hbm %s1075_s1, 1024 }
  0x38   : > { %p635_p2 = scmp.lt.u32.totalorder %s930_s23, %s1075_s1  ;;  %p636_p5 = scmp.lt.u32.totalorder %s634_s18, %s629_s8 }
  0x39   : > { %p632_p6 = pnand %p630_p1, %p601_p3  ;;  %p638_p7 = scmp.lt.u32.totalorder %s629_s8, %s930_s23 }
  0x3a   : > { %p637_p4 = por %p636_p5, %p635_p2 }
  0x3b   : > { %p633_p13 = pneg %p632_p6 }
  0x3c   : > { %p639_p10 = por %p638_p7, %p637_p4 }
  0x3e   : > { %p640_p9 = pnand %p639_p10, %p633_p13 }
  0x40   : > { %643 = shalt.err (!%p640_p9)
}
  0x41   : > { %s644_s29 = scalar_lea.vmem %s940_s7, 512  ;;  %s782_s5 = smov [#allocation5]  }
  0x42   : > { %p645_p11 = scmp.ne.s32.totalorder %s940_s7, %s644_s29  ;;  %s649_s30 = sshll.u32 %s782_s5, 4  ;;  %s650_s30 = int_to_ptr.vmem [resolvable:$false] %s649_s30 }
  0x43   : > { %s651_s10 = scalar_lea.vmem %s650_s30, 1024  ;;  %p652_p8 = scmp.lt.s32.totalorder %s940_s7, %s650_s30 }
  0x44   : > { %p647_p1 = pnand %p645_p11, %p601_p3  ;;  %p653_p2 = scmp.lt.s32.totalorder %s651_s10, %s644_s29 }
  0x46   : > { %p648_p6 = pneg %p647_p1  ;;  %p654_p5 = por %p653_p2, %p652_p8 }
  0x48   : > { %p655_p4 = pnand %p654_p5, %p648_p6 }
  0x4a   : > { %658 = shalt.err (!%p655_p4)
}
  0x4b   : > { %538 = dma.hbm_to_vmem [thread:$0]  (!%p888_p0), %s930_s23, 512, %s940_s7, %s203_s6, %s780_s11, %s780_s11, %s781_s19  }
  0x4c   : > { %227 = sbr.rel (%p934_p12) target bundleno = 137 (0x89), region = 28  ;;  %s974_s8 = sand.u32 (!%p934_p12), 1, %s761_s13  }
  0x4d   : > { %s511_s18 = sshll.u32 (!%p934_p12), %s974_s8, 5  ;;  %s230_s21 = scalar_lea.sflag (!%p934_p12), [#allocation3], %s974_s8 }
  0x4e   : > { %s233_s9 = scalar_lea.vmem (!%p934_p12), [#allocation2], %s511_s18  ;;  %p1087_p8 = scmp.ne.s32.totalorder (!%p934_p12), %s1081_s24, 0 }
  0x53   : > { %740 = dma.done.wait (%p1087_p8), %s230_s21, 512  }
  0x54   : > { %742 = vsyncadd (%p1087_p8), %s230_s21, 4294966784  ;;  %s239_s28 = scalar_lea.sflag [#allocation6], %s974_s8  ;;  %s242_s11 = scalar_lea.vmem [#allocation5], %s511_s18 }
  0x55   : > { %744 = dma.done.wait (%p1087_p8), %s239_s28, 512  }
  0x56   : > { %746 = vsyncadd (%p1087_p8), %s239_s28, 4294966784  ;;  %v283_v0 = vld [vmem:[%s233_s9] sm:$0xff]  ;;  %v284_v1 = vld [vmem:[%s233_s9 + $0x8] sm:$0xff]  ;;  %s513_s19 = sshll.u32 %s974_s8, 3  ;;  %s518_s24 = sshll.u32 %s769_s15, 7  ;;  %v783_v25 = vmov 0.0  }
  0x57   : > { %v285_v2 = vld [vmem:[%s233_s9 + $0x10] sm:$0xff]  ;;  %v286_v3 = vld [vmem:[%s233_s9 + $0x18] sm:$0xff]  ;;  %v287_v4 = vld [vmem:[%s242_s11] sm:$0xff]  ;;  %v305_v6 = vadd.f32 %v284_v1, %v283_v0  ;;  %s274_s23 = scalar_lea.vmem [#allocation8], %s513_s19  ;;  %s989_s7 = scalar_lea.vmem [#allocation7], %s513_s19 }
  0x58   : > { %v288_v5 = vld [vmem:[%s242_s11 + $0x8] sm:$0xff]  ;;  %v289_v7 = vld [vmem:[%s242_s11 + $0x10] sm:$0xff]  ;;  %v290_v8 = vld [vmem:[%s242_s11 + $0x18] sm:$0xff]  ;;  %v291_v9 = vsub.f32 %v283_v0, %v287_v4  ;;  %s356_s4 = sshll.u32 %s274_s23, 4  ;;  %s342_s6 = sshll.u32 %s989_s7, 4  ;;  %s997_s4 = int_to_ptr.vmem [resolvable:$true] %s356_s4  ;;  %s1004_s6 = int_to_ptr.vmem [resolvable:$true] %s342_s6 }
  0x59   : > { %v292_v10 = vsub.f32 %v284_v1, %v288_v5  ;;  %v302_v11 = vadd.f32 %v288_v5, %v287_v4  ;;  %v293_v12 = vsub.f32 %v285_v2, %v289_v7  ;;  %v294_v13 = vsub.f32 %v286_v3, %v290_v8  ;;  %s995_s5 = scalar_lea.hbm %s1077_s3, %s518_s24  ;;  %s1002_s10 = scalar_lea.hbm %s1076_s2, %s518_s24 }
  0x5a   : > { %v306_v14 = vadd.f32 %v305_v6, %v285_v2  ;;  %v295_v15 = vand.u32 2147483647, %v291_v9  ;;  %s328_s18 = scalar_lea.sflag [#allocation9], %s974_s8  ;;  %s659_s21 = scalar_lea.vmem %s997_s4, 128 }
  0x5b   : > { %v296_v16 = vand.u32 2147483647, %v292_v10  ;;  %v303_v17 = vadd.f32 %v302_v11, %v289_v7  ;;  %v297_v18 = vand.u32 2147483647, %v293_v12  ;;  %v298_v20 = vand.u32 2147483647, %v294_v13  ;;  %p660_p0 = scmp.ne.s32.totalorder %s997_s4, %s659_s21 }
  0x5c   : > { %v307_v19 = vadd.f32 %v306_v14, %v286_v3  ;;  %p1088_p3 = scmp.ne.s32.totalorder %s1082_s25, 0  ;;  %s784_s9 = smov [#allocation8]  }
  0x5d   : > { %v299_v21 = vadd.f32 %v296_v16, %v295_v15  ;;  %v304_v22 = vadd.f32 %v303_v17, %v290_v8  ;;  %s663_s28 = sshll.u32 %s784_s9, 4  ;;  %s664_s28 = int_to_ptr.vmem [resolvable:$false] %s663_s28 }
  0x5e   : > { %vm309_vm0 = vcmp.gt.f32.partialorder %v307_v19, 0.0  ;;  %p661_p12 = pnand %p660_p0, %p1088_p3  ;;  %s665_s11 = scalar_lea.vmem %s664_s28, 256 }
  0x5f   : > { %v300_v23 = vadd.f32 %v299_v21, %v297_v18  ;;  %vm308_vm1 = vcmp.gt.f32.partialorder %v304_v22, 0.0  ;;  %p666_p7 = scmp.lt.s32.totalorder %s997_s4, %s664_s28  ;;  %p667_p10 = scmp.lt.s32.totalorder %s665_s11, %s659_s21 }
  0x60   : > { %vm310_vm2 = vmand %vm308_vm1, %vm309_vm0  ;;  %p662_p13 = pneg %p661_p12 }
  0x61   : > { %v301_v24 = vadd.f32 %v300_v23, %v298_v20  ;;  %v515_v26 = vsel %vm310_vm2, 1.0, %v783_v25  ;;  %p668_p9 = por %p667_p10, %p666_p7 }
  0x62   : > { %321 = vst [vmem:[%s274_s23] sm:$0xff] %v515_v26 }
  0x63   : > { %v313_v27 = vmul.f32 %v515_v26, %v301_v24  ;;  %p669_p11 = pnand %p668_p9, %p662_p13 }
  0x65   : > { %672 = shalt.err (!%p669_p11)
}
  0x66   : > { %s673_s19 = scalar_lea.hbm %s995_s5, 128  ;;  %s677_s22 = scalar_lea.hbm %s1077_s3, 256 }
  0x67   : > { %p674_p1 = scmp.ne.s32.totalorder %s995_s5, %s673_s19  ;;  %p678_p5 = scmp.lt.u32.totalorder %s995_s5, %s1077_s3 }
  0x68   : > { %p679_p4 = scmp.lt.u32.totalorder %s677_s22, %s673_s19  ;;  %p681_p0 = scmp.lt.u32.totalorder %s673_s19, %s995_s5 }
  0x69   : > { %p675_p6 = pnand %p674_p1, %p1088_p3 }
  0x6a   : > { %p680_p8 = por %p679_p4, %p678_p5 }
  0x6b   : > { %p676_p2 = pneg %p675_p6 }
  0x6c   : > { %p682_p12 = por %p681_p0, %p680_p8 }
  0x6e   : > { %p683_p13 = pnand %p682_p12, %p676_p2 }
  0x70   : > { %686 = shalt.err (!%p683_p13)
}
  0x71   : > { %529 = dma.vmem_to_hbm [thread:$0]  (%p1088_p3), %s997_s4, 128, %s995_s5, %s328_s18   ;;  %318 = vst [vmem:[%s989_s7] sm:$0xff] %v313_v27 }
  0x72   : > { %s323_s30 = scalar_lea.sflag [#allocation4], %s974_s8  ;;  %s687_s21 = scalar_lea.vmem %s1004_s6, 128 }
  0x73   : > { %p688_p7 = scmp.ne.s32.totalorder %s1004_s6, %s687_s21  ;;  %s785_s9 = smov [#allocation7]  }
  0x74   : > { %s691_s28 = sshll.u32 %s785_s9, 4  ;;  %s692_s28 = int_to_ptr.vmem [resolvable:$false] %s691_s28 }
  0x75   : > { %p689_p10 = pnand %p688_p7, %p1088_p3  ;;  %s693_s11 = scalar_lea.vmem %s692_s28, 256 }
  0x76   : > { %p694_p11 = scmp.lt.s32.totalorder %s1004_s6, %s692_s28  ;;  %p695_p1 = scmp.lt.s32.totalorder %s693_s11, %s687_s21 }
  0x77   : > { %p690_p9 = pneg %p689_p10 }
  0x78   : > { %p696_p6 = por %p695_p1, %p694_p11 }
  0x7a   : > { %p697_p2 = pnand %p696_p6, %p690_p9 }
  0x7c   : > { %700 = shalt.err (!%p697_p2)
}
  0x7d   : > { %s701_s8 = scalar_lea.hbm %s1002_s10, 128  ;;  %s705_s5 = scalar_lea.hbm %s1076_s2, 256 }
  0x7e   : > { %p702_p5 = scmp.ne.s32.totalorder %s1002_s10, %s701_s8  ;;  %p706_p0 = scmp.lt.u32.totalorder %s1002_s10, %s1076_s2 }
  0x7f   : > { %p707_p12 = scmp.lt.u32.totalorder %s705_s5, %s701_s8  ;;  %p709_p7 = scmp.lt.u32.totalorder %s701_s8, %s1002_s10 }
  0x80   : > { %p703_p4 = pnand %p702_p5, %p1088_p3 }
  0x81   : > { %p708_p13 = por %p707_p12, %p706_p0 }
  0x82   : > { %p704_p8 = pneg %p703_p4 }
  0x83   : > { %p710_p10 = por %p709_p7, %p708_p13 }
  0x85   : > { %p711_p9 = pnand %p710_p10, %p704_p8 }
  0x87   : > { %714 = shalt.err (!%p711_p9)
}
  0x88   : > { %528 = dma.vmem_to_hbm [thread:$0]  (%p1088_p3), %s1004_s6, 128, %s1002_s10, %s323_s30  }
  0x89 PF: > { %s368_s24 = sand.u32 1, %s757_s12   ;;  %p1089_p11 = scmp.ne.s32.totalorder %s1083_s27, 0 }
  0x8a   : > { %p1090_p1 = scmp.ge.s32.totalorder %s777_s17, 2  ;;  %s369_s23 = scalar_lea.sflag [#allocation4], %s368_s24 }
  0x8c   : > { %p540_p6 = pnand %p1090_p1, %p1089_p11 }
  0x8e   : > { %748 = dma.done.wait (!%p540_p6), %s369_s23, 128  }
  0x8f   : > { %750 = vsyncadd (!%p540_p6), %s369_s23, 4294967168  ;;  %s378_s22 = scalar_lea.sflag [#allocation9], %s368_s24 }
  0x90   : > { %752 = dma.done.wait (!%p540_p6), %s378_s22, 128  }
  0x91   : > { %754 = vsyncadd (!%p540_p6), %s378_s22, 4294967168  ;;  %s26_s17 = sadd.s32 1, %s777_s17   ;;  %s1091_s12 = smov %s761_s13 }
  0x92   : > { %p23_p2 = scmp.ge.s32.totalorder %s26_s17, 4   ;;  %s1092_s13 = smov %s765_s14 }
  0x93   : > { %s1093_s14 = smov %s862_s26  ;;  %s1094_s15 = smov %s773_s16 }
  0x94   : > { %s1095_s16 = smov %s1097_s20  ;;  %25 = sbr.rel (!%p23_p2) target bundleno = 10 (0xa), region = 107 }
  0x9b   :  { %383 = vsyncpa [#allocation3], 1 }
  0x9c   :  { %385 = vsyncpa [#allocation3 + $0x1], 1 }
  0x9d   :  { %386 = vsyncpa [#allocation6], 1 }
  0x9e   :  { %388 = vsyncpa [#allocation6 + $0x1], 1 }
  0x9f   :  { %389 = vsyncpa [#allocation4], 1 }
  0xa0   :  { %391 = vsyncpa [#allocation4 + $0x1], 1 }
  0xa1   :  { %392 = vsyncpa [#allocation9], 1 }
  0xa2   :  { %394 = vsyncpa [#allocation9 + $0x1], 1 }

</bundles_post_ra>
